<compile_context>
chip_gen: v5e
topology: v5e:2x2
jax: 0.10.0
libtpu: 0.0.40
codegen_flags: <defaults>
</compile_context>

<pallas_src>
import functools

import numpy as np
import jax
import jax.numpy as jnp
from jax import lax
from jax.experimental import pallas as pl
from jax.experimental.pallas import tpu as pltpu

# ----------------------------- static config -------------------------------
H = 32          # image height
W = 32          # image width
HID = 4         # hidden channels of the synthetic segment_fn
SIGMA = 5.0
KS = 41         # cv2.GaussianBlur auto ksize for float input, sigma=5
PAD = KS // 2

OUT_ROWS = 40       # 32 image rows + 8-row loss band (lane-dense output slab)
CA_ROWS = 840       # packed constant slab A: 2*384 conv1 + 2*32 blur + 8 bias


# ===================== host-side constant construction ======================

def _gauss_taps(ks, sigma):
    x = np.arange(ks, dtype=np.float64) - (ks - 1) / 2.0
    g = np.exp(-(x * x) / (2.0 * sigma * sigma))
    return (g / g.sum()).astype(np.float32)


def _refl101(t, n):
    """cv2 BORDER_REFLECT_101 (= BORDER_DEFAULT) index folding."""
    p = 2 * (n - 1)
    t = t % p
    return t if t < n else p - t


def _blur_operator(n, taps):
    """1-D Gaussian blur with reflect-101 borders as an n x n matrix O.
    The separable 2-D blur is then  O @ X @ O^T  (two MXU matmuls)."""
    o = np.zeros((n, n), np.float64)
    pad = (len(taps) - 1) // 2
    for i in range(n):
        for k, g in enumerate(taps):
            o[i, _refl101(i - pad + k, n)] += g
    return o.astype(np.float32)


def _toeplitz3(w0, w1, w2, n):
    """n x n banded matrix T with T[j', j] = w[j' - j + 1] for |j' - j| <= 1."""
    return w0 * np.eye(n, k=1) + w1 * np.eye(n) + w2 * np.eye(n, k=-1)


def _conv_g(w_eff, n=W):
    """Block-Toeplitz conv matrices (3, cin*n, cout*n) such that a 3x3
    zero-padded conv of the lane-stacked image X (n, cin*n) is
        Y (n, cout*n) = sum_u  shift_row_u(X) @ G[u]
    with u = 0/1/2 reading rows i-1 / i / i+1."""
    cout, cin = w_eff.shape[0], w_eff.shape[1]
    g = np.zeros((3, cin * n, cout * n), np.float32)
    for u in range(3):
        for ci in range(cin):
            for co in range(cout):
                g[u, ci * n:(ci + 1) * n, co * n:(co + 1) * n] = _toeplitz3(
                    w_eff[co, ci, u, 0], w_eff[co, ci, u, 1],
                    w_eff[co, ci, u, 2], n)
    return g


def _conv_g_stacked(w_eff, n=W):
    """Stack the three row-offset blocks along K so the conv is ONE matmul of
    [x(i-1) | x | x(i+1)]  (n, 3*cin*n)  @  G  (3*cin*n, cout*n)."""
    g = _conv_g(w_eff, n)
    return g.reshape(g.shape[0] * g.shape[1], g.shape[2])


def init_params():
    k1, k2, k3, k4 = jax.random.split(jax.random.PRNGKey(42), 4)
    return {
        "w1": jax.random.normal(k1, (HID, 4, 3, 3), jnp.float32) * 0.3,
        "b1": jax.random.normal(k2, (HID,), jnp.float32) * 0.05,
        "w2": jax.random.normal(k3, (1, HID, 3, 3), jnp.float32) * 0.3,
        "b2": jax.random.normal(k4, (1,), jnp.float32) * 0.05,
        "gauss_taps": jnp.asarray(_gauss_taps(KS, SIGMA)),
    }


def build_constants(params):
    w1 = np.asarray(params["w1"], np.float32)     # (HID, 4, 3, 3)
    b1 = np.asarray(params["b1"], np.float32)
    w2 = np.asarray(params["w2"], np.float32)     # (1, HID, 3, 3)
    b2 = np.asarray(params["b2"], np.float32)
    taps = np.asarray(params["gauss_taps"], np.float32)

    blur_o = _blur_operator(H, taps)              # (32, 32)

    # --- stage-1 conv1: both branches in one matmul ------------------------
    # input lanes  : [a | unsharp | f0 | f1]             (cin = 4)
    # output lanes : [h1_V (HID*W) | h1_A (HID*W)]       (cout = 2*HID)
    w_s1 = np.zeros((2 * HID, 4, 3, 3), np.float32)
    w_s1[:HID, 0] = w1[:, 0]                      # mask_V branch: a
    w_s1[:HID, 1] = w1[:, 1]                      #                unsharp
    w_s1[HID:, 0] = w1[:, 0] + w1[:, 1]           # synt_A branch: [a, a] folded
    w_s1[HID:, 2] = w1[:, 2]                      #                f0
    w_s1[HID:, 3] = w1[:, 3]                      #                f1
    g1 = _conv_g_stacked(w_s1)                    # (384, 256)

    # --- stage-2 conv1: mask_F branch + recon conditioning part ------------
    # input lanes  : [synt_A | mv0 | mv1 | 0-pad]         (cin = 4, aligned)
    # output lanes : [h1_F (HID*W) | recon cond part (HID*W)]
    w_s2 = np.zeros((2 * HID, 4, 3, 3), np.float32)
    w_s2[:HID, 0] = w1[:, 0] + w1[:, 1]           # mask_F: [synt_A, synt_A]
    w_s2[HID:, 1] = w1[:, 2]                      # recon cond: mv0
    w_s2[HID:, 2] = w1[:, 3]                      #             mv1
    g1b = _conv_g_stacked(w_s2)                   # (384, 256)

    # --- conv2, block-diagonal over the two fused branches (shared by both
    #     stages) ------------------------------------------------------------
    g2 = _conv_g(w2)                              # (3, HID*W, W)
    g2bd = np.zeros((3, 2 * HID * W, 2 * W), np.float32)
    for u in range(3):
        g2bd[u, :HID * W, :W] = g2[u]
        g2bd[u, HID * W:, W:] = g2[u]
    g2bd = g2bd.reshape(3 * 2 * HID * W, 2 * W)   # (768, 64)

    # --- pack everything else into one lane-dense slab ---------------------
    ca = np.zeros((CA_ROWS, 256), np.float32)
    ca[0:384, :] = g1
    ca[384:768, :] = g1b
    ca[768:800, 0:32] = blur_o
    ca[800:832, 0:32] = blur_o.T
    ca[832, :] = np.tile(np.repeat(b1, W), 2)     # [b1 | b1]  (1, 256)
    ca[833, 0:64] = np.tile(np.repeat(b2, W), 2)  # [b2 | b2]  (1, 64)

    return {"cA": jnp.asarray(ca), "cB": jnp.asarray(g2bd)}


# ===================== pltpu.roll convention probe ==========================

def _roll_probe_kernel(x_ref, o_ref):
    o_ref[...] = pltpu.roll(x_ref[...], 1, 0)


def detect_roll_convention():
    """True iff pltpu.roll follows np.roll semantics (out[i] = in[i - shift])."""
    x = jnp.arange(8 * 128, dtype=jnp.float32).reshape(8, 128)
    y = pl.pallas_call(
        _roll_probe_kernel,
        out_shape=jax.ShapeDtypeStruct((8, 128), jnp.float32),
        in_specs=[pl.BlockSpec(memory_space=pltpu.MemorySpace.VMEM)],
        out_specs=pl.BlockSpec(memory_space=pltpu.MemorySpace.VMEM),
    )(x)
    return bool(np.asarray(y)[1, 0] == np.asarray(x)[0, 0])


# ============================== Pallas kernel ===============================

def _build_css_kernel(roll_numpy):
    f32 = jnp.float32

    def kernel(a_ref, f_ref, ca_ref, cb_ref, out_ref):
        a = a_ref[...]                      # (H, W)
        f = f_ref[...]

        # ---- packed constants: static slices of the slab ------------------
        g1 = ca_ref[0:384, :]               # stage-1 conv1  (384, 256)
        g1b = ca_ref[384:768, :]            # stage-2 conv1  (384, 256)
        bo = ca_ref[768:800, 0:32]          # blur operator  (32, 32)
        bot = ca_ref[800:832, 0:32]         # its transpose
        bias = ca_ref[832:840, :]           # (8, 256) bias band
        b1_2 = bias[0:1, :]                 # (1, 256)  [b1 | b1]
        b2_2 = bias[1:2, 0:64]              # (1, 64)   [b2 | b2]
        g2bd = cb_ref[...]                  # (768, 64) block-diag conv2

        def mm(x, y):
            return jnp.dot(x, y, preferred_element_type=f32)

        rows = lax.broadcasted_iota(jnp.int32, (H, 1), 0)
        not_top = (rows > 0).astype(f32)        # zero for row 0
        not_bot = (rows < H - 1).astype(f32)    # zero for row H-1

        def shift_cat(x):
            """[x(row i-1) | x | x(row i+1)] with zero padding rows; rolls run
            on the XLU so the conv itself is a single MXU matmul."""
            r_a = pltpu.roll(x, 1, 0)
            r_b = pltpu.roll(x, H - 1, 0)
            xm, xp = (r_a, r_b) if roll_numpy else (r_b, r_a)
            return jnp.concatenate([xm * not_top, x, xp * not_bot], axis=1)

        def onehot_pair(x):
            # torch.eye(2)[:, clamp_min(x, 0).long()] -> [idx==0, idx==1]
            hi = (jnp.maximum(x, 0.0) >= 1.0).astype(f32)
            return 1.0 - hi, hi

        relu = lambda x: jnp.maximum(x, 0.0)

        # Gaussian blur (sigma=5, reflect-101) + unsharp mask: 2 MXU matmuls.
        blur = mm(mm(bo, a), bot)
        unsharp = 2.0 * a - blur
        f0, f1 = onehot_pair(f)

        # ---- stage 1: mask_V and synt_A branches, fused --------------------
        x1 = jnp.concatenate([a, unsharp, f0, f1], axis=1)       # (32, 128)
        pre1 = mm(shift_cat(x1), g1)                             # (32, 256)
        z_au = pre1[:, 0:128]          # conv1([a, unsharp]) - reused by recon
        h1 = relu(pre1 + b1_2)                                   # [h1_V | h1_A]
        out1 = jnp.tanh(mm(shift_cat(h1), g2bd) + b2_2)          # [mask_V|synt_A]
        mask_v = out1[:, 0:32]
        synt_a = out1[:, 32:64]

        # ---- stage 2: mask_F and reconstruction branches, fused ------------
        mv0, mv1 = onehot_pair(mask_v)
        x2 = jnp.concatenate([synt_a, mv0, mv1,
                              jnp.zeros((H, W), f32)], axis=1)   # (32, 128)
        pre2 = mm(shift_cat(x2), g1b)                            # (32, 256)
        h1f = relu(pre2[:, 0:128] + b1_2[:, 0:128])
        h1r = relu(pre2[:, 128:256] + z_au + b1_2[:, 128:256])
        h2 = jnp.concatenate([h1f, h1r], axis=1)                 # (32, 256)
        out2 = jnp.tanh(mm(shift_cat(h2), g2bd) + b2_2)          # [mask_F|recon]
        mask_f = out2[:, 0:32]
        recon = out2[:, 32:64]

        # ---- losses: one fused lane-concatenated reduction -----------------
        # L1Loss(reduction='sum')(recon, a) / (b*c*h*w); L1Loss()(mask_F, F);
        # BCELoss()(unscale(mask_F,(-1,1)), (unscale(F,(-1,1)) > 0.6).float())
        p = jnp.clip((mask_f + 1.0) * 0.5, 1e-7, 1.0 - 1e-7)
        t = ((f + 1.0) * 0.5 > 0.6).astype(f32)
        bce = -(t * jnp.log(p) + (1.0 - t) * jnp.log(1.0 - p))
        err = jnp.concatenate(
            [jnp.abs(recon - a), jnp.abs(mask_f - f), bce], axis=1)  # (32, 96)
        col = jnp.sum(err, axis=0, keepdims=True)                    # (1, 96)
        n_inv = 1.0 / float(H * W)
        l_recon = jnp.sum(col[:, 0:32]) * n_inv
        l_l1 = jnp.sum(col[:, 32:64]) * n_inv
        l_bce = jnp.sum(col[:, 64:96]) * n_inv

        # ---- single lane-dense output slab ----------------------------------
        out_ref[0:H, :] = jnp.concatenate([blur, out1, mask_f], axis=1)
        ridx = lax.broadcasted_iota(jnp.int32, (OUT_ROWS - H, 128), 0)
        out_ref[H:OUT_ROWS, :] = jnp.where(
            ridx == 0, l_recon,
            jnp.where(ridx == 1, l_l1, jnp.where(ridx == 2, l_bce, 0.0)))

    return kernel


def css_generator_forward(a_nchw, f_nchw, consts, *, roll_numpy=True):
    """Mirrors CssGenerator.p_losses (b == c == 1, as implied by the double
    .squeeze() on the input image in the reference)."""
    vmem = pltpu.MemorySpace.VMEM
    out = pl.pallas_call(
        _build_css_kernel(roll_numpy),
        out_shape=jax.ShapeDtypeStruct((OUT_ROWS, 128), jnp.float32),
        in_specs=[pl.BlockSpec(memory_space=vmem)] * 4,
        out_specs=pl.BlockSpec(memory_space=vmem),
    )(a_nchw[0, 0], f_nchw[0, 0], consts["cA"], consts["cB"])

    gauss = out[0:H, 0:32][None, None]
    mask_v = out[0:H, 32:64][None, None]
    synt_a = out[0:H, 64:96][None, None]
    mask_f = out[0:H, 96:128][None, None]
    tensors = [gauss, gauss, gauss, mask_v, synt_a, mask_f]
    # TODO(synk): soft_dice_cldice has no provided implementation; placeholder 0.
    losses = [out[H, 0], out[H + 1, 0], out[H + 2, 0], jnp.float32(0.0)]
    return tensors, losses


# ==================== pure-JAX reference (for validation) ===================

def _reference_forward(a_nchw, f_nchw, params):
    a = a_nchw[0, 0]
    f2 = f_nchw[0, 0]
    taps = params["gauss_taps"]
    xpad = jnp.pad(a, PAD, mode="reflect")               # BORDER_REFLECT_101
    acc = jnp.zeros((H + 2 * PAD, W), jnp.float32)
    for j in range(KS):
        acc = acc + taps[j] * xpad[:, j:j + W]
    blur = jnp.zeros((H, W), jnp.float32)
    for i in range(KS):
        blur = blur + taps[i] * acc[i:i + H, :]
    unsharp = 2.0 * a - blur

    w1, b1, w2, b2 = params["w1"], params["b1"], params["w2"], params["b2"]

    def conv(x, w, b):
        y = lax.conv_general_dilated(
            x[None], w, (1, 1), "SAME",
            dimension_numbers=("NCHW", "OIHW", "NCHW"),
            precision=lax.Precision.HIGHEST)[0]
        return y + b[:, None, None]

    def segment(x2, cond2):
        cond2 = jnp.zeros((2, H, W), jnp.float32) if cond2 is None else cond2
        xin = jnp.concatenate([x2, cond2], axis=0)
        h1 = jnp.maximum(conv(xin, w1, b1), 0.0)
        return jnp.tanh(conv(h1, w2, b2))[0]

    def onehot(x):
        hi = (jnp.maximum(x, 0.0) >= 1.0).astype(jnp.float32)
        return jnp.stack([1.0 - hi, hi], axis=0)

    mv = segment(jnp.stack([a, unsharp]), None)
    sa = segment(jnp.stack([a, a]), onehot(f2))
    mf = segment(jnp.stack([sa, sa]), None)
    rc = segment(jnp.stack([a, unsharp]), onehot(mv))

    n = float(H * W)
    l_recon = jnp.sum(jnp.abs(rc - a)) / n
    l_l1 = jnp.mean(jnp.abs(mf - f2))
    p = jnp.clip((mf + 1.0) * 0.5, 1e-7, 1.0 - 1e-7)
    t = ((f2 + 1.0) * 0.5 > 0.6).astype(jnp.float32)
    l_bce = jnp.mean(-(t * jnp.log(p) + (1.0 - t) * jnp.log(1.0 - p)))
    return blur, mv, sa, mf, jnp.stack([l_recon, l_l1, l_bce])


# ================================== main ====================================

if __name__ == "__main__":
    # One-time probe: pin down pltpu.roll's shift convention on this backend.
    roll_numpy = detect_roll_convention()

    key = jax.random.PRNGKey(0)
    k_a, k_f = jax.random.split(key)
    # x_in['A']: image in [0, 1]; x_in['F']: fractal map in [-1, 1]
    a_in = jax.random.uniform(k_a, (1, 1, H, W), jnp.float32, 0.0, 1.0)
    f_in = jax.random.uniform(k_f, (1, 1, H, W), jnp.float32, -1.0, 1.0)

    params = init_params()
    consts = build_constants(params)

    fwd = jax.jit(functools.partial(css_generator_forward,
                                    roll_numpy=roll_numpy))
    tensors, losses = fwd(a_in, f_in, consts)
    jax.block_until_ready((tensors, losses))

    # structural checks
    assert tensors[0].shape == (1, 1, H, W) and tensors[5].shape == (1, 1, H, W)
    assert all(bool(jnp.isfinite(l)) for l in losses)

    # numerical check against a pure-JAX / XLA reference of the same forward
    ref_blur, ref_mv, ref_sa, ref_mf, ref_losses = jax.jit(_reference_forward)(
        a_in, f_in, params)
    np.testing.assert_allclose(np.asarray(tensors[0][0, 0]), np.asarray(ref_blur),
                               rtol=2e-2, atol=2e-2)
    np.testing.assert_allclose(np.asarray(tensors[3][0, 0]), np.asarray(ref_mv),
                               rtol=2e-2, atol=2e-2)
    np.testing.assert_allclose(np.asarray(tensors[4][0, 0]), np.asarray(ref_sa),
                               rtol=2e-2, atol=2e-2)
    np.testing.assert_allclose(np.asarray(tensors[5][0, 0]), np.asarray(ref_mf),
                               rtol=2e-2, atol=2e-2)
    np.testing.assert_allclose(np.asarray(jnp.stack(losses[:3])),
                               np.asarray(ref_losses), rtol=5e-2, atol=5e-2)

    print("KERNEL_OK")
</pallas_src>

<mosaic_0001>
module attributes {stable_mosaic.version = 11 : i64} {
  func.func @_roll_probe_kernel(%arg0: memref<8x128xf32, #tpu.memory_space<vmem>>, %arg1: memref<8x128xf32, #tpu.memory_space<vmem>>) attributes {dimension_semantics = [], scalar_prefetch = 0 : i64, scratch_operands = 0 : i64, tpu.core_type = #tpu.core_type<tc>} {
    %c0 = arith.constant 0 : index
    %c0_0 = arith.constant 0 : index
    %0 = vector.load %arg0[%c0, %c0_0] : memref<8x128xf32, #tpu.memory_space<vmem>>, vector<8x128xf32>
    %c1_i32 = arith.constant 1 : i32
    %1 = tpu.dynamic_rotate %0 by %c1_i32 dim 0 : vector<8x128xf32>, i32 -> vector<8x128xf32>
    %c0_1 = arith.constant 0 : index
    %c0_2 = arith.constant 0 : index
    %2 = vector.load %arg1[%c0_1, %c0_2] : memref<8x128xf32, #tpu.memory_space<vmem>>, vector<8x128xf32>
    tpu.vector_store %arg1[%c0_1, %c0_2], %1 {strides = array<i32>} : memref<8x128xf32, #tpu.memory_space<vmem>>, vector<8x128xf32>,
    return
  }
}

</mosaic_0001>

<bundles_post_ra>
// kernel: tpu_custom_call.1
= control target key start
LH: loop header
LB: loop body
LE: loop exit
PB: predicated region body
PF: predicated region fallthrough
CT: control target
= control target key end

     0   :  { %6 = vsyncpa [#allocation3], 0  ;;  %s115_s0 = inlined_call_operand.hbm [shape: f32[8,128], index: 0, kind: input, shape index: {}]   ;;  %s116_s1 = inlined_call_operand.hbm [shape: f32[8,128], index: 1, kind: output, shape index: {}]  }
   0x1   :  { %7 = vsyncpa [#allocation4], 0  ;;  %s13_s8 = sshll.u32 %s115_s0, 4  ;;  %s97_s9 = smov [#allocation2]   ;;  %s14_s8 = int_to_ptr.hbm [resolvable:$true] %s13_s8 }
   0x2   :  { %s15_s10 = sshll.u32 %s97_s9, 4  ;;  %s16_s10 = int_to_ptr.vmem [resolvable:$true] %s15_s10 }
   0x3   :  { %18 = dma.hbm_to_vmem [thread:$0]  %s14_s8, 128, %s16_s10, [#allocation3]  }
   0x4   :  { %93 = dma.done.wait [#allocation3], 128  }
   0x5   :  { %94 = vsyncadd [#allocation3], 4294967168  ;;  %s98_s11 = smov [#allocation5]   ;;  %s33_s15 = sshll.u32 %s116_s1, 4  ;;  %v23_v0 = vld [vmem:[#allocation2] sm:$0xff]  ;;  %s34_s15 = int_to_ptr.hbm [resolvable:$true] %s33_s15 }
   0x6   :  { %s31_s12 = sshll.u32 %s98_s11, 4  ;;  %v24_v1 = vrot.slane %v23_v0, 7  ;;  %s32_s12 = int_to_ptr.vmem [resolvable:$true] %s31_s12 }
   0x8   :  { %25 = vst [vmem:[#allocation5] sm:$0xff] %v24_v1 }
   0x9   :  { %36 = dma.vmem_to_hbm [thread:$0]  %s32_s12, 128, %s34_s15, [#allocation4]  }
   0xa   :  { %95 = dma.done.wait [#allocation4], 128  }
   0xb   :  { %96 = vsyncadd [#allocation4], 4294967168 }
   0xc   :  { %41 = vsyncpa [#allocation3], 1 }
   0xd   :  { %42 = vsyncpa [#allocation4], 1 }

</bundles_post_ra>
